<compile_context>
chip_gen: v7x
topology: tpu7x:2x2x1
jax: 0.10.0
libtpu: 0.0.40
codegen_flags: <defaults>
</compile_context>

<pallas_src>
import functools

import jax
import jax.numpy as jnp
from jax.experimental import pallas as pl
from jax.experimental.pallas import tpu as pltpu

_LANES = 128
_SUBLANES = 8
# ~4 MiB (f32) per block buffer; with double-buffered input+output that is <= 16 MiB of
# scoped VMEM, covered by the explicit vmem_limit_bytes below on every chip generation.
_MAX_BLOCK_ROWS = 8192                 # rows of 128 lanes per block
_MAX_FLAT_BLOCK = 128 * 1024           # lanes per block for the ragged (1, k) fallback (~4 MiB footprint)
# Split a single aligned block in two once each half is >= 1 MiB so ("parallel",) can
# engage both v7x TensorCores; the extra ~0.35 us grid step is noise at that size.
_MIN_SPLIT_ROWS = 2048
_VMEM_LIMIT_BYTES = 32 * 1024 * 1024


def _apply_power(x, power):
    """pow(x, power) with compile-time specialization for integer exponents.

    Integer exponents (the common MPPI case: 1, 2, ...) use exponentiation-by-squaring,
    i.e. only VALU multiplies -- no EUP exp/log, and correct for negative bases
    (matching torch.pow with an integer-valued exponent)."""
    p = float(power)
    if p == int(p) and abs(int(p)) <= 32:
        n = int(p)
        if n == 0:
            return jnp.ones_like(x)
        neg = n < 0
        n = abs(n)
        result = None
        base = x
        while n:
            if n & 1:
                result = base if result is None else result * base
            n >>= 1
            if n:
                base = base * base
        if neg:
            result = 1.0 / result
        return result
    # Genuinely non-integer exponent: same semantics as torch.pow (NaN for negative base).
    return jnp.power(x, jnp.float32(p))


def _critic_pow_kernel(weight_ref, cost_ref, out_ref, *, power):
    # weight_ref: (1,) f32 in SMEM; cost_ref/out_ref: 2-D blocks in VMEM.
    w = weight_ref[0]
    x = cost_ref[...].astype(jnp.float32) * w          # compute in f32 regardless of I/O dtype
    out_ref[...] = _apply_power(x, power).astype(out_ref.dtype)


def critic_apply(cost: jax.Array, weight, power) -> jax.Array:
    """Applies pow(weight * cost, power) elementwise via a Pallas TPU kernel.

    `cost` may have any shape; the result has the same shape and (f32/bf16-preserving) dtype.
    `power` must be a static Python number: it selects the integer-power specialization at
    trace time (each distinct power compiles once; `weight` is a runtime scalar)."""
    try:
        power = float(power)
    except Exception as e:  # traced / abstract value
        raise TypeError(
            "`power` must be a static Python number: it selects the integer-power kernel "
            "specialization at trace time (each distinct power compiles once)."
        ) from e

    cost = jnp.asarray(cost)
    compute_dtype = cost.dtype if cost.dtype in (jnp.float32, jnp.bfloat16) else jnp.float32
    cost = cost.astype(compute_dtype)
    orig_shape = cost.shape
    flat = cost.reshape(-1)
    k = flat.shape[0]
    if k == 0:  # empty cost vector: nothing to do
        return flat.reshape(orig_shape)

    kernel = functools.partial(_critic_pow_kernel, power=power)
    w_arr = jnp.full((1,), weight, dtype=jnp.float32)  # runtime scalar -> no recompile per weight

    def run(cost2d, block_shape, index_map, num_blocks):
        return pl.pallas_call(
            kernel,
            out_shape=jax.ShapeDtypeStruct(cost2d.shape, compute_dtype),
            grid=(num_blocks,),
            in_specs=[
                pl.BlockSpec(memory_space=pltpu.MemorySpace.SMEM),   # weight scalar
                pl.BlockSpec(block_shape, index_map),                # cost tile
            ],
            out_specs=pl.BlockSpec(block_shape, index_map),
            compiler_params=pltpu.CompilerParams(
                dimension_semantics=("parallel",),
                vmem_limit_bytes=_VMEM_LIMIT_BYTES),
        )(w_arr, cost2d)

    if k % _LANES == 0:
        # Lane/sublane-dense (rows, 128) layout; zero-copy reshape, no pad, no tail slice.
        rows = k // _LANES
        if rows <= _MAX_BLOCK_ROWS:
            if rows >= _MIN_SPLIT_ROWS and rows % (2 * _SUBLANES) == 0:
                block_rows = rows // 2        # 2 grid steps -> both v7x TensorCores engaged
            else:
                block_rows = rows             # single full-dims block (legal for any rows)
        else:
            block_rows = _MAX_BLOCK_ROWS      # multiple of 8; ragged last block masked by Pallas
        out2d = run(flat.reshape(rows, _LANES), (block_rows, _LANES),
                    lambda i: (i, 0), pl.cdiv(rows, block_rows))
    else:
        # Ragged K: keep the flat (1, k) view (zero-copy) and tile the lane axis instead of
        # padding + slicing in the wrapper; boundary block masked by Pallas.
        block_k = k if k <= _MAX_FLAT_BLOCK else _MAX_FLAT_BLOCK
        out2d = run(flat.reshape(1, k), (1, block_k),
                    lambda i: (0, i), pl.cdiv(k, block_k))

    return out2d.reshape(orig_shape)


class Critic:
    """Pallas equivalent of the PyTorch Critic base class (no learned parameters)."""

    def __init__(self, weight: float = 1.0, power: float = 1.0) -> None:
        self.weight = weight
        self.power = power

    def forward(self, trajectory, goal_pose, control):
        # TODO(synk): base-class forward raises NotImplementedError in the PyTorch source;
        # concrete cost functions live in subclasses, so only __call__'s transform is ported.
        raise NotImplementedError

    def __call__(self, trajectory, goal_pose, control):
        cost = self.forward(trajectory, goal_pose, control)
        return critic_apply(cost, self.weight, self.power)


class _ExampleGoalCritic(Critic):
    """Minimal concrete subclass used only to exercise the kernel in the demo:
    per-rollout squared distance of the final trajectory pose (x, y) to the goal pose."""

    def forward(self, trajectory, goal_pose, control):
        # trajectory: (K, T, 3) rollout states [x, y, theta]
        # goal_pose:  (3,)
        # control:    (K, T, 2) -- unused by this example cost.
        diff = trajectory[:, -1, :2] - goal_pose[:2]
        return jnp.sum(diff * diff, axis=-1)  # (K,)


if __name__ == "__main__":
    key = jax.random.PRNGKey(0)
    k_traj, k_goal, k_ctrl = jax.random.split(key, 3)

    K, T = 128, 16  # rollouts, horizon
    trajectory = jax.random.normal(k_traj, (K, T, 3), dtype=jnp.float32)
    goal_pose = jax.random.normal(k_goal, (3,), dtype=jnp.float32)
    control = jax.random.normal(k_ctrl, (K, T, 2), dtype=jnp.float32)

    critic = _ExampleGoalCritic(weight=1.5, power=2.0)
    out = critic(trajectory, goal_pose, control)
    out = jax.block_until_ready(out)

    # Reference check of __call__'s semantics in plain JAX (lane-aligned K path).
    ref = (1.5 * critic.forward(trajectory, goal_pose, control)) ** 2
    assert out.shape == (K,)
    assert out.dtype == jnp.float32
    assert bool(jnp.allclose(out, ref, rtol=1e-5, atol=1e-5))

    # Ragged (non-128-multiple) K + odd integer power with negative weighted costs:
    # zero-copy (1, k) path, NaN-free (torch.pow parity for integer-valued exponents).
    neg_costs = jnp.linspace(-2.0, 2.0, 257, dtype=jnp.float32)
    out3 = jax.block_until_ready(critic_apply(neg_costs, weight=0.7, power=3.0))
    ref3 = (0.7 * neg_costs) ** 3
    assert out3.shape == neg_costs.shape
    assert bool(jnp.all(jnp.isfinite(out3)))
    assert bool(jnp.allclose(out3, ref3, rtol=1e-5, atol=1e-5))

    # power == 1 (identity path) with a different weight: same compiled kernel shape-wise.
    out1 = jax.block_until_ready(critic_apply(neg_costs, weight=2.25, power=1.0))
    assert bool(jnp.allclose(out1, 2.25 * neg_costs, rtol=1e-6, atol=1e-6))

    # bf16 in -> bf16 out (HBM traffic halved); compute still runs in f32 in-register.
    neg_bf16 = neg_costs.astype(jnp.bfloat16)
    out_bf16 = jax.block_until_ready(critic_apply(neg_bf16, weight=0.7, power=3.0))
    assert out_bf16.dtype == jnp.bfloat16
    ref_bf16 = (0.7 * neg_bf16.astype(jnp.float32)) ** 3
    assert bool(jnp.allclose(out_bf16.astype(jnp.float32), ref_bf16, rtol=2e-2, atol=2e-2))

    # Aligned multi-step grid path (rows split in two -> megacore-shardable on v7x).
    big = jnp.linspace(-1.0, 1.0, 2048 * 128, dtype=jnp.float32)
    out_big = jax.block_until_ready(critic_apply(big, weight=1.3, power=2.0))
    assert bool(jnp.allclose(out_big, (1.3 * big) ** 2, rtol=1e-5, atol=1e-6))

    # Empty cost vector guard.
    empty = jax.block_until_ready(critic_apply(jnp.zeros((0,), jnp.float32), 1.0, 2.0))
    assert empty.shape == (0,)

    print("KERNEL_OK")
</pallas_src>

<mosaic_0001>
module attributes {stable_mosaic.version = 11 : i64} {
  func.func @_critic_pow_kernel(%arg0: i32, %arg1: memref<1xf32, #tpu.memory_space<smem>>, %arg2: memref<1x128xf32, #tpu.memory_space<vmem>>, %arg3: memref<1x128xf32, #tpu.memory_space<vmem>>) attributes {dimension_semantics = [#tpu.dimension_semantics<parallel>], iteration_bounds = array<i64: 1>, scalar_prefetch = 0 : i64, scratch_operands = 0 : i64, tpu.core_type = #tpu.core_type<tc>, window_params = [{transform_indices = @transform_0, window_bounds = array<i64: 1>}, {transform_indices = @transform_1, window_bounds = array<i64: 1, 128>}, {transform_indices = @transform_2, window_bounds = array<i64: 1, 128>}]} {
    %c0 = arith.constant 0 : index
    %0 = memref.load %arg1[%c0] : memref<1xf32, #tpu.memory_space<smem>>
    %c0_0 = arith.constant 0 : index
    %c0_1 = arith.constant 0 : index
    %1 = vector.load %arg2[%c0_0, %c0_1] : memref<1x128xf32, #tpu.memory_space<vmem>>, vector<1x128xf32>
    %2 = vector.broadcast %0 : f32 to vector<1x128xf32>
    %3 = arith.mulf %1, %2 : vector<1x128xf32>
    %4 = arith.mulf %3, %3 : vector<1x128xf32>
    %c0_2 = arith.constant 0 : index
    %c0_3 = arith.constant 0 : index
    %5 = vector.load %arg3[%c0_2, %c0_3] : memref<1x128xf32, #tpu.memory_space<vmem>>, vector<1x128xf32>
    tpu.vector_store %arg3[%c0_2, %c0_3], %4 {strides = array<i32>} : memref<1x128xf32, #tpu.memory_space<vmem>>, vector<1x128xf32>,
    return
  }
  func.func @transform_0(%arg0: i32) -> i32 {
    %c0_i32 = arith.constant 0 : i32
    %c0_i32_0 = arith.constant 0 : i32
    return %c0_i32 : i32
  }
  func.func @transform_1(%arg0: i32) -> (i32, i32) {
    %c0_i32 = arith.constant 0 : i32
    %c0_i32_0 = arith.constant 0 : i32
    return %arg0, %c0_i32 : i32, i32
  }
  func.func @transform_2(%arg0: i32) -> (i32, i32) {
    %c0_i32 = arith.constant 0 : i32
    %c0_i32_0 = arith.constant 0 : i32
    return %arg0, %c0_i32 : i32, i32
  }
}

</mosaic_0001>

<bundles_post_ra>
// kernel: tpu_custom_call.1
= control target key start
LH: loop header
LB: loop body
LE: loop exit
PB: predicated region body
PF: predicated region fallthrough
CT: control target
= control target key end

     0   :  { %s92_s0 = inlined_call_operand.<no memory space> [shape: f32[1], index: 0, kind: input, shape index: {}]   ;;  %s93_s1 = inlined_call_operand.vmem [shape: f32[1,128], index: 1, kind: input, shape index: {}]   ;;  %s94_s2 = inlined_call_operand.hbm [shape: f32[1,128], index: 2, kind: output, shape index: {}]  }
   0x1   :  { %v14_v0 = vld [vmem:[%s93_s1] sm:$0x1]  ;;  %v15_v1 = vstv %s92_s0 }
   0x2   :  { %8 = vsyncpa [#allocation4], 0  ;;  %v16_v2 = vmul.f32 %v15_v1, %v14_v0  ;;  %s58_s13 = smov [#allocation3]  }
   0x3   :  { %s25_s14 = sshll.u32 %s58_s13, 4  ;;  %s26_s14 = int_to_ptr.vmem [resolvable:$true] %s25_s14 }
   0x4   :  { %v17_v3 = vmul.f32 %v16_v2, %v16_v2  ;;  %s34_s15 = scalar_lea.vmem %s26_s14, 16  ;;  %s38_s16 = scalar_lea.vmem %s26_s14, 32 }
   0x5   :  { %p35_p0 = scmp.ne.s32.totalorder %s26_s14, %s34_s15  ;;  %p39_p1 = scmp.lt.s32.totalorder %s26_s14, %s26_s14 }
   0x6   :  { %18 = vst [vmem:[#allocation3] sm:$0x1] %v17_v3  ;;  %p40_p2 = scmp.lt.s32.totalorder %s38_s16, %s34_s15 }
   0x8   :  { %p41_p3 = por %p40_p2, %p39_p1 }
   0xa   :  { %p42_p4 = pnand %p41_p3, %p35_p0 }
   0xc   :  { %45 = shalt.err (!%p42_p4)
}
   0xd   :  { %s46_s18 = scalar_lea.hbm %s94_s2, 16 }
   0xe   :  { %p47_p5 = scmp.ne.s32.totalorder %s94_s2, %s46_s18  ;;  %p50_p6 = scmp.lt.u32.totalorder %s46_s18, %s94_s2 }
  0x10   :  { %p52_p7 = pnand %p50_p6, %p47_p5 }
  0x12   :  { %55 = shalt.err (!%p52_p7)
}
  0x13   :  { %28 = dma.vmem_to_hbm [thread:$0]  %s26_s14, 16, %s94_s2, [#allocation4]  }
  0x14   :  { %56 = dma.done.wait [#allocation4], 16  }
  0x15   :  { %57 = vsyncadd [#allocation4], 4294967280 }
  0x16   :  { %32 = vsyncpa [#allocation4], 1 }

</bundles_post_ra>
